<compile_context>
chip_gen: v7x
topology: tpu7x:2x2x1
jax: 0.10.0
libtpu: 0.0.40
codegen_flags: <defaults>
</compile_context>

<pallas_src>
import jax
import jax.numpy as jnp
from jax.experimental import pallas as pl
from jax.experimental.pallas import tpu as pltpu


# ---------------------------------------------------------------------------
# Fused kernel: one (batch, length-tile) grid point per invocation.
# ---------------------------------------------------------------------------
def _make_kernel(*, lt, n_l, k, c_out, c_in, has_skip):
    def kernel(*refs):
        if has_skip:
            xp_ref, w1_ref, w2_ref, bias_ref, ws_ref, o_ref = refs
        else:
            xp_ref, w1_ref, w2_ref, bias_ref, o_ref = refs

        # Window of the (zero-)padded input covering global padded columns
        # [t*lt, t*lt + lt + 4): enough halo for two radius-1 convolutions.
        if n_l == 1:
            xw = xp_ref[...]                                   # (c_in, lt + 4)
        else:
            start = pl.multiple_of(pl.program_id(1) * lt, lt)
            xw = xp_ref[:, pl.ds(start, lt + 4)]

        b1 = bias_ref[:, 0:1]                                  # (c_out, 1)
        b2 = bias_ref[:, 1:2]                                  # (c_out, 1) (skip bias folded in)

        # ---- conv1 (+ folded BN1) + ReLU on lt+2 columns: k shifted matmuls
        h1 = jnp.dot(w1_ref[0], xw[:, 0:lt + 2],
                     preferred_element_type=jnp.float32)
        for kk in range(1, k):
            h1 = h1 + jnp.dot(w1_ref[kk], xw[:, kk:kk + lt + 2],
                              preferred_element_type=jnp.float32)
        h1 = jnp.maximum(h1 + b1, 0.0)

        # conv2's padding=1 pads the *activation* with zeros, so halo columns
        # outside [0, L) must be zeroed (they hold relu(b1) otherwise).
        # Only the first/last tile's edge column can be out of range.
        col = jax.lax.broadcasted_iota(jnp.int32, (1, lt + 2), 1)
        if n_l == 1:
            kill = (col == 0) | (col == lt + 1)
        else:
            t = pl.program_id(1)
            kill = ((col == 0) & (t == 0)) | ((col == lt + 1) & (t == n_l - 1))
        h1 = jnp.where(kill, 0.0, h1)

        # ---- conv2 (+ folded BN2): k shifted matmuls -> (c_out, lt)
        y = jnp.dot(w2_ref[0], h1[:, 0:lt], preferred_element_type=jnp.float32)
        for kk in range(1, k):
            y = y + jnp.dot(w2_ref[kk], h1[:, kk:kk + lt],
                            preferred_element_type=jnp.float32)

        # ---- skip path: reuse the conv1 window (center lt columns of xw)
        xt = xw[:, 2:lt + 2]                                   # (c_in, lt)
        if has_skip:
            idn = jnp.dot(ws_ref[...], xt, preferred_element_type=jnp.float32)
        else:
            idn = xt                                           # identity skip

        o_ref[...] = jnp.maximum(y + b2 + idn, 0.0)

    return kernel


# ---------------------------------------------------------------------------
# Wrapper: fold BN, pad x by the conv halo once, launch the fused kernel.
# ---------------------------------------------------------------------------
def residual_block_forward(x, params, *, lt=None, eps=1e-5):
    B, c_in, L = x.shape
    c_out, _, k = params["conv1_w"].shape
    if lt is None:
        lt = L
    assert L % lt == 0, "L must be a multiple of the length tile"
    assert lt == L or lt % 128 == 0, "length tiles must be 128-lane multiples"
    n_l = L // lt

    # fold BatchNorm (inference mode, running stats) into the convolutions
    def fold(w, b, gamma, beta, rm, rv):
        scale = gamma / jnp.sqrt(rv + eps)
        return w * scale[:, None, None], (b - rm) * scale + beta

    w1f, b1f = fold(params["conv1_w"], params["conv1_b"],
                    params["bn1_gamma"], params["bn1_beta"],
                    params["bn1_mean"], params["bn1_var"])
    w2f, b2f = fold(params["conv2_w"], params["conv2_b"],
                    params["bn2_gamma"], params["bn2_beta"],
                    params["bn2_mean"], params["bn2_var"])

    # kernel-friendly, tap-major weight layouts
    w1t = jnp.transpose(w1f, (2, 0, 1))            # (k, c_out, c_in)
    w2t = jnp.transpose(w2f, (2, 0, 1))            # (k, c_out, c_out)

    has_skip = params.get("skip_w") is not None
    if has_skip:
        ws = params["skip_w"][:, :, 0]             # (c_out, c_in)
        bias2 = b2f + params["skip_b"]             # fold skip bias into b2
    else:
        ws = None
        bias2 = b2f
    bias = jnp.stack([b1f, bias2], axis=1)         # (c_out, 2): one bias stream

    # pad once by the total conv halo (2 columns each side); no im2col copy
    xp = jnp.pad(x, ((0, 0), (0, 0), (2, 2)))      # (B, c_in, L + 4)

    kern = _make_kernel(lt=lt, n_l=n_l, k=k, c_out=c_out, c_in=c_in,
                        has_skip=has_skip)

    in_specs = [
        # full padded row per batch; constant block index over t -> fetched
        # once per batch, halo windows are sliced in VMEM inside the kernel.
        pl.BlockSpec((None, c_in, L + 4), lambda b, t: (b, 0, 0)),
        pl.BlockSpec((k, c_out, c_in), lambda b, t: (0, 0, 0)),
        pl.BlockSpec((k, c_out, c_out), lambda b, t: (0, 0, 0)),
        pl.BlockSpec((c_out, 2), lambda b, t: (0, 0)),
    ]
    operands = [xp, w1t, w2t, bias]
    if has_skip:
        in_specs.append(pl.BlockSpec((c_out, c_in), lambda b, t: (0, 0)))
        operands.append(ws)

    return pl.pallas_call(
        kern,
        out_shape=jax.ShapeDtypeStruct((B, c_out, L), jnp.float32),
        grid=(B, n_l),
        in_specs=in_specs,
        out_specs=pl.BlockSpec((None, c_out, lt), lambda b, t: (b, 0, t)),
        compiler_params=pltpu.CompilerParams(
            dimension_semantics=("parallel", "parallel")),
    )(*operands)


# ---------------------------------------------------------------------------
# Parameters + pure-JAX reference (PyTorch eval() semantics).
# ---------------------------------------------------------------------------
def init_params(key, c_in, c_out, k=3):
    ks = jax.random.split(key, 14)
    p = dict(
        conv1_w=jax.random.normal(ks[0], (c_out, c_in, k), jnp.float32) * 0.3,
        conv1_b=jax.random.normal(ks[1], (c_out,), jnp.float32) * 0.1,
        bn1_gamma=jax.random.uniform(ks[2], (c_out,), jnp.float32, 0.5, 1.5),
        bn1_beta=jax.random.normal(ks[3], (c_out,), jnp.float32) * 0.1,
        bn1_mean=jax.random.normal(ks[4], (c_out,), jnp.float32) * 0.1,
        bn1_var=jax.random.uniform(ks[5], (c_out,), jnp.float32, 0.5, 1.5),
        conv2_w=jax.random.normal(ks[6], (c_out, c_out, k), jnp.float32) * 0.2,
        conv2_b=jax.random.normal(ks[7], (c_out,), jnp.float32) * 0.1,
        bn2_gamma=jax.random.uniform(ks[8], (c_out,), jnp.float32, 0.5, 1.5),
        bn2_beta=jax.random.normal(ks[9], (c_out,), jnp.float32) * 0.1,
        bn2_mean=jax.random.normal(ks[10], (c_out,), jnp.float32) * 0.1,
        bn2_var=jax.random.uniform(ks[11], (c_out,), jnp.float32, 0.5, 1.5),
    )
    if c_in != c_out:
        p["skip_w"] = jax.random.normal(ks[12], (c_out, c_in, 1), jnp.float32) * 0.3
        p["skip_b"] = jax.random.normal(ks[13], (c_out,), jnp.float32) * 0.1
    else:
        p["skip_w"] = None
        p["skip_b"] = None
    return p


def reference_forward(x, p, eps=1e-5):
    hp = jax.lax.Precision.HIGHEST

    def conv1d(z, w, b, pad):
        y = jax.lax.conv_general_dilated(
            z, w, window_strides=(1,), padding=[(pad, pad)],
            dimension_numbers=("NCH", "OIH", "NCH"), precision=hp)
        return y + b[None, :, None]

    def bn(y, gamma, beta, rm, rv):
        inv = gamma / jnp.sqrt(rv + eps)
        return (y - rm[None, :, None]) * inv[None, :, None] + beta[None, :, None]

    identity = (conv1d(x, p["skip_w"], p["skip_b"], 0)
                if p["skip_w"] is not None else x)
    out = conv1d(x, p["conv1_w"], p["conv1_b"], 1)
    out = jnp.maximum(bn(out, p["bn1_gamma"], p["bn1_beta"],
                         p["bn1_mean"], p["bn1_var"]), 0.0)
    out = conv1d(out, p["conv2_w"], p["conv2_b"], 1)
    out = bn(out, p["bn2_gamma"], p["bn2_beta"], p["bn2_mean"], p["bn2_var"])
    return jnp.maximum(out + identity, 0.0)


if __name__ == "__main__":
    B, C_IN, C_OUT, L, K = 2, 4, 16, 256, 3
    key = jax.random.PRNGKey(0)
    pkey, xkey = jax.random.split(key)
    params = init_params(pkey, C_IN, C_OUT, K)
    x = jax.random.normal(xkey, (B, C_IN, L), jnp.float32)

    out = jax.block_until_ready(residual_block_forward(x, params))
    assert out.shape == (B, C_OUT, L)

    ref = reference_forward(x, params)
    assert jnp.allclose(out, ref, rtol=2e-2, atol=2e-2), float(
        jnp.max(jnp.abs(out - ref)))

    print("KERNEL_OK")
</pallas_src>

<mosaic_0001>
module attributes {stable_mosaic.version = 11 : i64} {
  func.func @kernel(%arg0: i32, %arg1: i32, %arg2: memref<1x4x260xf32, #tpu.memory_space<vmem>>, %arg3: memref<3x16x4xf32, #tpu.memory_space<vmem>>, %arg4: memref<3x16x16xf32, #tpu.memory_space<vmem>>, %arg5: memref<16x2xf32, #tpu.memory_space<vmem>>, %arg6: memref<16x4xf32, #tpu.memory_space<vmem>>, %arg7: memref<1x16x256xf32, #tpu.memory_space<vmem>>) attributes {dimension_semantics = [#tpu.dimension_semantics<parallel>, #tpu.dimension_semantics<parallel>], iteration_bounds = array<i64: 2, 1>, scalar_prefetch = 0 : i64, scratch_operands = 0 : i64, tpu.core_type = #tpu.core_type<tc>, window_params = [{transform_indices = @transform_0, window_bounds = array<i64: 1, 4, 260>}, {pipeline_mode = #tpu.pipeline_mode<synchronous>, transform_indices = @transform_1, window_bounds = array<i64: 3, 16, 4>}, {pipeline_mode = #tpu.pipeline_mode<synchronous>, transform_indices = @transform_2, window_bounds = array<i64: 3, 16, 16>}, {pipeline_mode = #tpu.pipeline_mode<synchronous>, transform_indices = @transform_3, window_bounds = array<i64: 16, 2>}, {pipeline_mode = #tpu.pipeline_mode<synchronous>, transform_indices = @transform_4, window_bounds = array<i64: 16, 4>}, {transform_indices = @transform_5, window_bounds = array<i64: 1, 16, 256>}]} {
    %c0 = arith.constant 0 : index
    %c0_0 = arith.constant 0 : index
    %c0_1 = arith.constant 0 : index
    %0 = vector.load %arg2[%c0, %c0_0, %c0_1] : memref<1x4x260xf32, #tpu.memory_space<vmem>>, vector<1x4x260xf32>
    %1 = vector.shape_cast %0 : vector<1x4x260xf32> to vector<4x260xf32>
    %c0_2 = arith.constant 0 : index
    %c0_3 = arith.constant 0 : index
    %2 = vector.load %arg5[%c0_2, %c0_3] : memref<16x2xf32, #tpu.memory_space<vmem>>, vector<16x1xf32>
    %c0_4 = arith.constant 0 : index
    %c1 = arith.constant 1 : index
    %3 = vector.load %arg5[%c0_4, %c1] : memref<16x2xf32, #tpu.memory_space<vmem>>, vector<16x1xf32>
    %c0_5 = arith.constant 0 : index
    %c0_6 = arith.constant 0 : index
    %c0_7 = arith.constant 0 : index
    %4 = vector.load %arg3[%c0_5, %c0_6, %c0_7] : memref<3x16x4xf32, #tpu.memory_space<vmem>>, vector<1x16x4xf32>
    %5 = vector.shape_cast %4 : vector<1x16x4xf32> to vector<16x4xf32>
    %6 = vector.extract_strided_slice %1 {offsets = [0, 0], sizes = [4, 258], strides = [1, 1]} : vector<4x260xf32> to vector<4x258xf32>
    %cst = arith.constant dense<0.000000e+00> : vector<16x258xf32>
    %7 = tpu.matmul %5, %6, %cst {dimension_numbers = #tpu.dot_dimension_numbers<[1], [0], [0], [1], [0, 0, 1, 1], [], []>} : vector<16x4xf32>, vector<4x258xf32>, vector<16x258xf32> -> vector<16x258xf32>
    %c1_8 = arith.constant 1 : index
    %c0_9 = arith.constant 0 : index
    %c0_10 = arith.constant 0 : index
    %8 = vector.load %arg3[%c1_8, %c0_9, %c0_10] : memref<3x16x4xf32, #tpu.memory_space<vmem>>, vector<1x16x4xf32>
    %9 = vector.shape_cast %8 : vector<1x16x4xf32> to vector<16x4xf32>
    %10 = vector.extract_strided_slice %1 {offsets = [0, 1], sizes = [4, 258], strides = [1, 1]} : vector<4x260xf32> to vector<4x258xf32>
    %cst_11 = arith.constant dense<0.000000e+00> : vector<16x258xf32>
    %11 = tpu.matmul %9, %10, %cst_11 {dimension_numbers = #tpu.dot_dimension_numbers<[1], [0], [0], [1], [0, 0, 1, 1], [], []>} : vector<16x4xf32>, vector<4x258xf32>, vector<16x258xf32> -> vector<16x258xf32>
    %12 = arith.addf %7, %11 : vector<16x258xf32>
    %c2 = arith.constant 2 : index
    %c0_12 = arith.constant 0 : index
    %c0_13 = arith.constant 0 : index
    %13 = vector.load %arg3[%c2, %c0_12, %c0_13] : memref<3x16x4xf32, #tpu.memory_space<vmem>>, vector<1x16x4xf32>
    %14 = vector.shape_cast %13 : vector<1x16x4xf32> to vector<16x4xf32>
    %15 = vector.extract_strided_slice %1 {offsets = [0, 2], sizes = [4, 258], strides = [1, 1]} : vector<4x260xf32> to vector<4x258xf32>
    %cst_14 = arith.constant dense<0.000000e+00> : vector<16x258xf32>
    %16 = tpu.matmul %14, %15, %cst_14 {dimension_numbers = #tpu.dot_dimension_numbers<[1], [0], [0], [1], [0, 0, 1, 1], [], []>} : vector<16x4xf32>, vector<4x258xf32>, vector<16x258xf32> -> vector<16x258xf32>
    %17 = arith.addf %12, %16 : vector<16x258xf32>
    %18 = vector.broadcast %2 : vector<16x1xf32> to vector<16x258xf32>
    %19 = arith.addf %17, %18 : vector<16x258xf32>
    %cst_15 = arith.constant 0.000000e+00 : f32
    %20 = vector.broadcast %cst_15 : f32 to vector<16x258xf32>
    %21 = arith.maximumf %19, %20 : vector<16x258xf32>
    %22 = tpu.iota {dimensions = array<i32: 1>} : vector<1x258xi32>
    %c0_i32 = arith.constant 0 : i32
    %23 = vector.broadcast %c0_i32 : i32 to vector<1x258xi32>
    %24 = arith.cmpi eq, %22, %23 : vector<1x258xi32>
    %c257_i32 = arith.constant 257 : i32
    %25 = vector.broadcast %c257_i32 : i32 to vector<1x258xi32>
    %26 = arith.cmpi eq, %22, %25 : vector<1x258xi32>
    %27 = arith.ori %24, %26 : vector<1x258xi1>
    %cst_16 = arith.constant 0.000000e+00 : f32
    %28 = vector.shape_cast %27 : vector<1x258xi1> to vector<1x258xi1>
    %29 = vector.broadcast %28 : vector<1x258xi1> to vector<16x258xi1>
    %30 = vector.broadcast %cst_16 : f32 to vector<16x258xf32>
    %31 = arith.select %29, %30, %21 : vector<16x258xi1>, vector<16x258xf32>
    %c0_17 = arith.constant 0 : index
    %c0_18 = arith.constant 0 : index
    %c0_19 = arith.constant 0 : index
    %32 = vector.load %arg4[%c0_17, %c0_18, %c0_19] : memref<3x16x16xf32, #tpu.memory_space<vmem>>, vector<1x16x16xf32>
    %33 = vector.shape_cast %32 : vector<1x16x16xf32> to vector<16x16xf32>
    %34 = vector.extract_strided_slice %31 {offsets = [0, 0], sizes = [16, 256], strides = [1, 1]} : vector<16x258xf32> to vector<16x256xf32>
    %cst_20 = arith.constant dense<0.000000e+00> : vector<16x256xf32>
    %35 = tpu.matmul %33, %34, %cst_20 {dimension_numbers = #tpu.dot_dimension_numbers<[1], [0], [0], [1], [0, 0, 1, 1], [], []>} : vector<16x16xf32>, vector<16x256xf32>, vector<16x256xf32> -> vector<16x256xf32>
    %c1_21 = arith.constant 1 : index
    %c0_22 = arith.constant 0 : index
    %c0_23 = arith.constant 0 : index
    %36 = vector.load %arg4[%c1_21, %c0_22, %c0_23] : memref<3x16x16xf32, #tpu.memory_space<vmem>>, vector<1x16x16xf32>
    %37 = vector.shape_cast %36 : vector<1x16x16xf32> to vector<16x16xf32>
    %38 = vector.extract_strided_slice %31 {offsets = [0, 1], sizes = [16, 256], strides = [1, 1]} : vector<16x258xf32> to vector<16x256xf32>
    %cst_24 = arith.constant dense<0.000000e+00> : vector<16x256xf32>
    %39 = tpu.matmul %37, %38, %cst_24 {dimension_numbers = #tpu.dot_dimension_numbers<[1], [0], [0], [1], [0, 0, 1, 1], [], []>} : vector<16x16xf32>, vector<16x256xf32>, vector<16x256xf32> -> vector<16x256xf32>
    %40 = arith.addf %35, %39 : vector<16x256xf32>
    %c2_25 = arith.constant 2 : index
    %c0_26 = arith.constant 0 : index
    %c0_27 = arith.constant 0 : index
    %41 = vector.load %arg4[%c2_25, %c0_26, %c0_27] : memref<3x16x16xf32, #tpu.memory_space<vmem>>, vector<1x16x16xf32>
    %42 = vector.shape_cast %41 : vector<1x16x16xf32> to vector<16x16xf32>
    %43 = vector.extract_strided_slice %31 {offsets = [0, 2], sizes = [16, 256], strides = [1, 1]} : vector<16x258xf32> to vector<16x256xf32>
    %cst_28 = arith.constant dense<0.000000e+00> : vector<16x256xf32>
    %44 = tpu.matmul %42, %43, %cst_28 {dimension_numbers = #tpu.dot_dimension_numbers<[1], [0], [0], [1], [0, 0, 1, 1], [], []>} : vector<16x16xf32>, vector<16x256xf32>, vector<16x256xf32> -> vector<16x256xf32>
    %45 = arith.addf %40, %44 : vector<16x256xf32>
    %46 = vector.extract_strided_slice %1 {offsets = [0, 2], sizes = [4, 256], strides = [1, 1]} : vector<4x260xf32> to vector<4x256xf32>
    %c0_29 = arith.constant 0 : index
    %c0_30 = arith.constant 0 : index
    %47 = vector.load %arg6[%c0_29, %c0_30] : memref<16x4xf32, #tpu.memory_space<vmem>>, vector<16x4xf32>
    %cst_31 = arith.constant dense<0.000000e+00> : vector<16x256xf32>
    %48 = tpu.matmul %47, %46, %cst_31 {dimension_numbers = #tpu.dot_dimension_numbers<[1], [0], [0], [1], [0, 0, 1, 1], [], []>} : vector<16x4xf32>, vector<4x256xf32>, vector<16x256xf32> -> vector<16x256xf32>
    %49 = vector.broadcast %3 : vector<16x1xf32> to vector<16x256xf32>
    %50 = arith.addf %45, %49 : vector<16x256xf32>
    %51 = arith.addf %50, %48 : vector<16x256xf32>
    %cst_32 = arith.constant 0.000000e+00 : f32
    %52 = vector.broadcast %cst_32 : f32 to vector<16x256xf32>
    %53 = arith.maximumf %51, %52 : vector<16x256xf32>
    %c0_33 = arith.constant 0 : index
    %c0_34 = arith.constant 0 : index
    %c0_35 = arith.constant 0 : index
    %54 = vector.load %arg7[%c0_33, %c0_34, %c0_35] : memref<1x16x256xf32, #tpu.memory_space<vmem>>, vector<1x16x256xf32>
    %55 = vector.shape_cast %54 : vector<1x16x256xf32> to vector<16x256xf32>
    %56 = vector.shape_cast %53 : vector<16x256xf32> to vector<1x16x256xf32>
    tpu.vector_store %arg7[%c0_33, %c0_34, %c0_35], %56 {strides = array<i32>} : memref<1x16x256xf32, #tpu.memory_space<vmem>>, vector<1x16x256xf32>,
    return
  }
  func.func @transform_0(%arg0: i32, %arg1: i32) -> (i32, i32, i32) {
    %c0_i32 = arith.constant 0 : i32
    %c0_i32_0 = arith.constant 0 : i32
    %c0_i32_1 = arith.constant 0 : i32
    return %arg0, %c0_i32, %c0_i32_0 : i32, i32, i32
  }
  func.func @transform_1(%arg0: i32, %arg1: i32) -> (i32, i32, i32) {
    %c0_i32 = arith.constant 0 : i32
    %c0_i32_0 = arith.constant 0 : i32
    %c0_i32_1 = arith.constant 0 : i32
    %c0_i32_2 = arith.constant 0 : i32
    return %c0_i32, %c0_i32_0, %c0_i32_1 : i32, i32, i32
  }
  func.func @transform_2(%arg0: i32, %arg1: i32) -> (i32, i32, i32) {
    %c0_i32 = arith.constant 0 : i32
    %c0_i32_0 = arith.constant 0 : i32
    %c0_i32_1 = arith.constant 0 : i32
    %c0_i32_2 = arith.constant 0 : i32
    return %c0_i32, %c0_i32_0, %c0_i32_1 : i32, i32, i32
  }
  func.func @transform_3(%arg0: i32, %arg1: i32) -> (i32, i32) {
    %c0_i32 = arith.constant 0 : i32
    %c0_i32_0 = arith.constant 0 : i32
    %c0_i32_1 = arith.constant 0 : i32
    return %c0_i32, %c0_i32_0 : i32, i32
  }
  func.func @transform_4(%arg0: i32, %arg1: i32) -> (i32, i32) {
    %c0_i32 = arith.constant 0 : i32
    %c0_i32_0 = arith.constant 0 : i32
    %c0_i32_1 = arith.constant 0 : i32
    return %c0_i32, %c0_i32_0 : i32, i32
  }
  func.func @transform_5(%arg0: i32, %arg1: i32) -> (i32, i32, i32) {
    %c0_i32 = arith.constant 0 : i32
    %c0_i32_0 = arith.constant 0 : i32
    return %arg0, %c0_i32, %arg1 : i32, i32, i32
  }
}

</mosaic_0001>

<bundles_post_ra>
// kernel: tpu_custom_call.1
= control target key start
LH: loop header
LB: loop body
LE: loop exit
PB: predicated region body
PF: predicated region fallthrough
CT: control target
= control target key end

     0   :  { %10 = vsyncpa [#allocation3], 0  ;;  %s1918_s0 = inlined_call_operand.vmem [shape: f32[2,4,260], index: 0, kind: input, shape index: {}]   ;;  %s1919_s1 = inlined_call_operand.vmem [shape: f32[3,16,4], index: 1, kind: input, shape index: {}]   ;;  %s1920_s2 = inlined_call_operand.vmem [shape: f32[3,16,16], index: 2, kind: input, shape index: {}]   ;;  %s1921_s3 = inlined_call_operand.vmem [shape: f32[16,2], index: 3, kind: input, shape index: {}]   ;;  %s1922_s4 = inlined_call_operand.vmem [shape: f32[16,4], index: 4, kind: input, shape index: {}]   ;;  %s1923_s5 = inlined_call_operand.hbm [shape: f32[2,16,256], index: 5, kind: output, shape index: {}]  }
   0x1   :  { %12 = vsyncpa [#allocation3 + $0x1], 0  ;;  %s1661_s18 = smov 0   ;;  %s1663_s19 = smov 0  }
   0x2   :  { %s1665_s20 = smov 0   ;;  %s1667_s21 = smov 0  }
   0x3   :  { %s1669_s22 = smov 0   ;;  %s1671_s23 = smov 0  }
   0x4 LB: > { %s1324_s24 = sadd.s32 4294967295, %s1621_s23   ;;  %s1325_s25 = sadd.s32 4294967294, %s1621_s23   ;;  %s1621_s23 = sphi %s1671_s23, %s18_s23   ;;  %s1617_s22 = sphi %s1669_s22, %s1930_s22   ;;  %s1613_s21 = sphi %s1667_s21, %s1929_s21   ;;  %s1609_s20 = sphi %s1665_s20, %s1928_s20   ;;  %s1605_s19 = sphi %s1663_s19, %s1927_s19   ;;  %s1601_s18 = sphi %s1661_s18, %s1926_s18  }
   0x5   : > { %s30_s26 = sadd.s32 1, %s1617_s22  ;;  %s149_s27 = sadd.s32 1, %s1609_s20 }
   0x6   : > { %p32_p0 = scmp.ge.s32.totalorder %s30_s26, 2  ;;  %p159_p1 = scmp.ne.s32.totalorder %s1609_s20, %s1605_s19 }
   0x7   : > { %p160_p2 = scmp.eq.s32.totalorder %s1324_s24, 1  ;;  %p165_p3 = scmp.ne.s32.totalorder %s1605_s19, %s1601_s18 }
   0x8   : > { %s1932_s26 = smov (%p32_p0, %s30_s26), 0  ;;  %p166_p5 = scmp.eq.s32.totalorder %s1325_s25, 1 }
   0x9   : > { %p1701_p4 = por %p160_p2, %p159_p1  ;;  %s144_s29 = ssub.s32 %s1617_s22, %s1932_s26 }
   0xa   : > { %p1328_p6 = scmp.ge.s32.totalorder %s1621_s23, 1  ;;  %p147_p7 = scmp.eq.s32.totalorder %s144_s29, 0 }
   0xb   : > { %p1708_p8 = por %p166_p5, %p165_p3  ;;  %p204_p9 = scmp.lt.s32.totalorder %s1621_s23, 3 }
   0xc   : > { %s1714_s6 = scalar_select %p147_p7, %s1609_s20, %s149_s27  }
   0xd   : > { %p205_p10 = pnand %p1328_p6, %p204_p9 }
   0xe   : > { %p232_p11 = scmp.lt.s32.totalorder (!%p205_p10), %s1613_s21, 1  ;;  %v1331_v0 = vld [vmem:[%s1919_s1 + $0x10] sm:$0xff] (!%p205_p10)  ;;  %vm259_vm0 = vcmask (!%p205_p10), 31744   ;;  %v1623_v1 = vmov (!%p205_p10), 0.0   ;;  %s1624_s14 = smov (!%p205_p10), 127   ;;  %v1735_v5 = vld [vmem:[%s1921_s3 + $0x8] sm:$0xff] (!%p205_p10)  ;;  %v793_v23 = vlaneseq (!%p205_p10) }
   0xf   : > { %208 = sbr.rel (%p205_p10) target bundleno = 761 (0x2f9), region = 40  ;;  %1391 = vmatprep.mubr.msk.f32.mxu1 (!%p205_p10), %vm259_vm0, %v1331_v0  ;;  %337 = vmatprep.mubr.f32.mxu0 (!%p205_p10), %v1623_v1  ;;  %s1625_s15 = smov (!%p205_p10), 126   ;;  %v1740_v6 = vld [vmem:[%s1921_s3] sm:$0xff] (!%p205_p10)  ;;  %v1626_v7 = vmov (!%p205_p10), 0   ;;  %vm266_vm1 = vcmask (!%p205_p10), 1043456   ;;  %vm256_vm2 = vcmask (!%p205_p10), 1039360  }
  0x10   : > { %1509 = vset.pattern.permute.xlu1 (!%p205_p10), %v1626_v7  ;;  %1508 = vset.pattern.permute.xlu0 (!%p205_p10), %v1626_v7  ;;  %v1332_v11 = vld [vmem:[%s1919_s1 + $0x18] sm:$0xff] (!%p205_p10)  ;;  %vm598_vm3 = vcmask (!%p205_p10), 1031168   ;;  %v242_v15 = vld [vmem:[%s1919_s1] sm:$0xff] (!%p205_p10)  ;;  %v243_v19 = vld [vmem:[%s1919_s1 + $0x8] sm:$0xff] (!%p205_p10)  ;;  %v794_v24 = vand.u32 (!%p205_p10), 127, %v793_v23  ;;  %vm849_vm8 = vcmask (!%p205_p10), 130048  }
  0x11   : > { %v1347_v21 = vld [vmem:[%s1919_s1 + $0x20] sm:$0xff] (!%p205_p10)  ;;  %v1348_v22 = vld [vmem:[%s1919_s1 + $0x28] sm:$0xff] (!%p205_p10)  ;;  %v1627_v57 = vmov (!%p205_p10), 1   ;;  %s229_s24 = sand.u32 (!%p205_p10), 1, %s1605_s19  }
  0x12   : > { %v796_v26 = vadd.s32 (!%p205_p10), 256, %v794_v24  ;;  %vm797_vm5 = vcmp.eq.s32.totalorder (!%p205_p10), %v794_v24, 0  ;;  %v818_v55 = vld [vmem:[%s1920_s2] sm:$0xff] (!%p205_p10)  ;;  %v819_v56 = vld [vmem:[%s1920_s2 + $0x8] sm:$0xff] (!%p205_p10)  ;;  %s1329_s25 = sshll.u32 (!%p205_p10), %s229_s24, 5 }
  0x13   : > { %vm1360_vm6 = vmneg (!%p205_p10), %vm797_vm5  ;;  %s231_s27 = scalar_lea.vmem (!%p205_p10), [#allocation2], %s1329_s25 }
  0x14   : > { %vm802_vm4 = vcmp.eq.s32.totalorder (!%p205_p10), %v796_v26, 257  ;;  %vm1411_vm7 = vmpackc.low (!%p205_p10), %vm1360_vm6, %vm1360_vm6 }
  0x16   : > { %s233_s9 = scalar_select %p232_p11, %s1613_s21, 1 }
  0x18   : > { %s1445_s10 = smul.u32 12, %s233_s9  ;;  %s1872_s9 = scalar_lea.sflag [#allocation3], %s229_s24 }
  0x1a   : > { %s236_s13 = scalar_lea.vmem %s1918_s0, %s1445_s10  ;;  %s1628_s10 = smov [#allocation2]  }
  0x1b   : > { %v238_v2 = vld [vmem:[%s236_s13] sm:$0xff]  ;;  %v239_v4 = vld [vmem:[%s236_s13 + $0x8] sm:$0xf]  ;;  %s1547_s11 = sshll.u32 %s1628_s10, 4  ;;  %s1548_s11 = int_to_ptr.vmem [resolvable:$false] %s1547_s11 }
  0x1c   : > { %250 = vrot.lane.b32.xlu1 %v238_v2, %s1624_s14  ;;  %v249_v3 = vcombine.high %v238_v2, %v238_v2  ;;  %s1549_s12 = scalar_lea.vmem %s1548_s11, 1024 }
  0x1e   : > { %252 = vrot.lane.b32.xlu0 %v249_v3, %s1624_s14 }
  0x20   : > { %594 = vrot.lane.b32.xlu1 %v249_v3, %s1625_s15 }
  0x22   : > { %254 = vrot.lane.b32.xlu0 %v239_v4, %s1624_s14 }
  0x24   : > { %592 = vrot.lane.b32.xlu1 %v238_v2, %s1625_s15 }
  0x26   : > { %596 = vrot.lane.b32.xlu0 %v239_v4, %s1625_s15 }
  0x28   : > { %778 = vperm.xlu1 %1509, %v1735_v5  }
  0x2a   : > { %773 = vperm.xlu0 %1508, %v1740_v6  }
  0x2c   : > { %1540 = vset.pattern.permute.xlu1 %v1627_v57 }
  0x2e   : > { %1541 = vset.pattern.permute.xlu0 %v1627_v57 }
  0x8e   : > { %v251_v9 = vpop.permute.xlu1 %250 }
  0x90   : > { %v253_v8 = vpop.permute.xlu0 %252 }
  0x91   : > { %v257_v14 = vsel %vm256_vm2, %v251_v9, %v253_v8 }
  0x92   : > { %v595_v13 = vpop.permute.xlu1 %594 }
  0x94   : > { %v255_v10 = vpop.permute.xlu0 %254 }
  0x95   : > { %1389 = vmatprep.subr.msk.mxu1 %vm266_vm1, %v255_v10  ;;  %v258_v12 = vsel %vm256_vm2, %v253_v8, %v255_v10 }
  0x96   : > { %1333 = vmatprep.subr.msk.mxu0 %vm266_vm1, %v258_v12  ;;  %1390 = vmatpush3.msk.msra.mxu1 %vm266_vm1, %v255_v10  ;;  %v593_v18 = vpop.permute.xlu1 %592 }
  0x97   : > { %1334 = vmatpush1.msk.msra.mxu0 %vm266_vm1, %v257_v14  ;;  %1392 = vmatmul.mubr.msk.f32.vlgmr.msra.gmra.mrb[0].mxu1 %vm259_vm0, %v1332_v11  ;;  %v1776_v20 = vsel %vm598_vm3, %v593_v18, %v595_v13  ;;  %v1366_v18 = vld [vmem:[%s1920_s2 + $0x20] sm:$0xff] }
  0x98   : > { %1335 = vmatmul.mubr.msk.f32.vlgmr.msra.gmra.mrb[0].mxu0 %vm259_vm0, %v1331_v0  ;;  %1340 = vmatprep.subr.msk.mxu0 %vm266_vm1, %v249_v3  ;;  %v597_v16 = vpop.permute.xlu0 %596 }
  0x99   : > { %343 = vmatprep.mubr.f32.mxu0 %v1623_v1  ;;  %1394 = vmatprep.subr.msk.mxu1 %vm266_vm1, %v239_v4  ;;  %v1762_v17 = vsel %vm598_vm3, %v595_v13, %v597_v16 }
  0x9a   : > { %1341 = vmatpush1.msk.msra.mxu0 %vm266_vm1, %v238_v2  ;;  %1395 = vmatpush3.msk.msra.mxu1 %vm266_vm1, %v239_v4 }
  0x9b   : > { %1396 = vmatprep.mubr.msk.f32.mxu1 %vm259_vm0, %v242_v15  ;;  %1349 = vmatprep.subr.msk.mxu0 %vm266_vm1, %v1762_v17 }
  0x9c   : > { %1336 = vmatmul.mubr.msk.f32.gmra.mrb[2].mxu0 %vm259_vm0, %v1332_v11  ;;  %1399 = vmatprep.subr.msk.mxu1 %vm266_vm1, %v597_v16 }
  0x9d   : > { %501 = vmatprep.mubr.f32.mxu0 %v1623_v1 }
  0x9f   : > { %1397 = vmatmul.mubr.msk.f32.vlgmr.msra.gmra.mrb[0].mxu1 %vm259_vm0, %v243_v19 }
  0xa0   : > { %1342 = vmatmul.mubr.msk.f32.vlgmr.msra.gmra.mrb[0].mxu0 %vm259_vm0, %v242_v15  ;;  %1400 = vmatpush3.msk.msra.mxu1 %vm266_vm1, %v597_v16 }
  0xa1   : > { %1350 = vmatpush1.msk.msra.mxu0 %vm266_vm1, %v1776_v20  ;;  %507 = vmatprep.mubr.f32.mxu0 %v1623_v1 }
  0xa2   : > { %1401 = vmatprep.mubr.msk.f32.mxu1 %vm259_vm0, %v1347_v21 }
  0xa4   : > { %1343 = vmatmul.mubr.msk.f32.gmra.mrb[2].mxu0 %vm259_vm0, %v243_v19 }
  0xa5   : > { %677 = vmatprep.mubr.f32.mxu0 %v1623_v1 }
  0xa7   : > { %1402 = vmatmul.mubr.msk.f32.vlgmr.msra.gmra.mrb[0].mxu1 %vm259_vm0, %v1348_v22  ;;  %v779_v25 = vpop.permute.xlu1 %778 }
  0xa8   : > { %1351 = vmatmul.mubr.msk.f32.vlgmr.msra.gmra.mrb[0].mxu0 %vm259_vm0, %v1347_v21  ;;  %1003 = vmatprep.mubr.f32.mxu1 %v1623_v1 }
  0xa9   : > { %683 = vmatprep.mubr.f32.mxu0 %v1623_v1  ;;  %v774_v27 = vpop.permute.xlu0 %773 }
  0xac   : > { %1352 = vmatmul.mubr.msk.f32.gmra.mrb[2].mxu0 %vm259_vm0, %v1348_v22 }
  0xad   : > { %920 = vmatprep.mubr.f32.mxu0 %v1623_v1 }
 0x17a   : > { %v1403_v28 = vpop.f32.mrb[0].mxu1 }
 0x17b   : > { %v679_v29 = vpop.f32.mrb[0].mxu0  ;;  %v756_v30 = vpop.f32.mrb[1].mxu1  ;;  %v786_v31 = vadd.f32 %v1403_v28, %v779_v25  ;;  %v1356_v28 = vld [vmem:[%s1920_s2 + $0x10] sm:$0xff] }
 0x17c   : > { %v781_v32 = vadd.f32 %v774_v27, %v679_v29  ;;  %v783_v33 = vadd.f32 %v774_v27, %v756_v30  ;;  %v681_v34 = vpop.f32.mrb[1].mxu0  ;;  %v1357_v29 = vld [vmem:[%s1920_s2 + $0x18] sm:$0xff]  ;;  %v1127_v30 = vld [vmem:[%s1922_s4 + $0x8] sm:$0xff] }
 0x17d   : > { %v782_v35 = vadd.f32 %v774_v27, %v681_v34  ;;  %v792_v39 = vmax.f32 %v786_v31, 0.0  ;;  %v1367_v27 = vld [vmem:[%s1920_s2 + $0x28] sm:$0xff] }
 0x17e   : > { %v789_v36 = vmax.f32 %v783_v33, 0.0  ;;  %v787_v40 = vmax.f32 %v781_v32, 0.0 }
 0x17f   : > { %v788_v37 = vmax.f32 %v782_v35, 0.0  ;;  %v685_v38 = vpop.f32.mrb[2].mxu0  ;;  %v817_v48 = vsel %vm802_vm4, 0.0, %v792_v39 }
 0x180   : > { %v784_v41 = vadd.f32 %v779_v25, %v685_v38  ;;  %v687_v42 = vpop.f32.mrb[3].mxu0  ;;  %v814_v43 = vsel %vm802_vm4, 0.0, %v789_v36  ;;  %v812_v51 = vsel %vm797_vm5, 0.0, %v787_v40 }
 0x181   : > { %v785_v44 = vadd.f32 %v779_v25, %v687_v42  ;;  %v1510_v45 = vpack.i.bf16 %v814_v43, %v788_v37 }
 0x182   : > { %v790_v46 = vmax.f32 %v784_v41, 0.0 }
 0x183   : > { %v791_v47 = vmax.f32 %v785_v44, 0.0  ;;  %1511 = vrot.lane.b32.xlu1 %v1510_v45, %s1625_s15 }
 0x184   : > { %v815_v49 = vsel %vm797_vm5, 0.0, %v790_v46  ;;  %v1410_v50 = vpack.c.bf16 %v790_v46, %v787_v40 }
 0x185   : > { %v1515_v52 = vpack.i.bf16 %v817_v48, %v791_v47  ;;  %v1408_v53 = vpack.c.bf16 %v791_v47, %v788_v37  ;;  %v1520_v54 = vpack.i.bf16 %v815_v49, %v812_v51 }
 0x187   : > { %1516 = vrot.lane.b32.xlu0 %v1515_v52, %s1625_s15  ;;  %1409 = vmatprep.subr.bf16.mxu1 %v1408_v53 }
 0x188   : > { %1521 = vrot.lane.b32.xlu1 %v1520_v54, %s1625_s15  ;;  %1412 = vmatpush1.bf16.msk.msra.mxu1 %vm1411_vm7, %v1410_v50  ;;  %s1379_s15 = sshll.u32 %s1613_s21, 9 }
 0x189   : > { %s1868_s8 = scalar_lea.hbm %s1923_s5, %s1379_s15 }
 0x18b   : > { %1526 = vrot.lane.b32.xlu0 %v1510_v45, %s1624_s14  ;;  %1364 = vmatmul.mubr.msk.f32.vlgmr.msra.gmra.mrb[2].mxu1 %vm849_vm8, %v818_v55 }
 0x18c   : > { %1531 = vrot.lane.b32.xlu1 %v1515_v52, %s1624_s14  ;;  %1009 = vmatprep.mubr.f32.mxu1 %v1623_v1 }
 0x18f   : > { %1536 = vrot.lane.b32.xlu0 %v1520_v54, %s1624_s14  ;;  %1365 = vmatmul.mubr.msk.f32.gmra.mrb[4].mxu1 %vm849_vm8, %v819_v56  ;;  %s1251_s14 = sshll.u32 %s231_s27, 4  ;;  %s1863_s14 = int_to_ptr.vmem [resolvable:$true] %s1251_s14 }
 0x190   : > { %1109 = vmatprep.mubr.f32.mxu1 %v1623_v1  ;;  %1212 = vperm.xlu1 %1540, %v1740_v6   ;;  %s1543_s21 = scalar_lea.vmem %s1863_s14, 512  ;;  %p1550_p1 = scmp.lt.s32.totalorder %s1863_s14, %s1548_s11 }
 0x191   : > { %p1544_p12 = scmp.ne.s32.totalorder %s1863_s14, %s1543_s21  ;;  %p1551_p2 = scmp.lt.s32.totalorder %s1549_s12, %s1543_s21 }
 0x193   : > { %1216 = vperm.xlu0 %1541, %v1735_v5   ;;  %p1545_p13 = pnand %p1544_p12, %p1701_p4  ;;  %p1552_p3 = por %p1551_p2, %p1550_p1 }
 0x195   : > { %p1546_p0 = pneg %p1545_p13 }
 0x197   : > { %p1553_p5 = pnand %p1552_p3, %p1546_p0 }
 0x1f5   : > { %v1512_v58 = vpop.permute.xlu1 %1511 }
 0x1f6   : > { %v1514_v59 = vunpack.i.h.bf16 %v1512_v58  ;;  %v1513_v60 = vunpack.i.l.bf16 %v1512_v58 }
 0x1f8   : > { %v1032_v4 = vsel %vm598_vm3, %v1513_v60, %v1514_v59 }
 0x1f9   : > { %v1517_v61 = vpop.permute.xlu0 %1516 }
 0x1fa   : > { %v1522_v62 = vpop.permute.xlu1 %1521  ;;  %v1519_v63 = vunpack.i.h.bf16 %v1517_v61  ;;  %v1518_v0 = vunpack.i.l.bf16 %v1517_v61 }
 0x1fb   : > { %v1524_v2 = vunpack.i.h.bf16 %v1522_v62  ;;  %v1523_v3 = vunpack.i.l.bf16 %v1522_v62 }
 0x1fc   : > { %v1034_v7 = vsel %vm598_vm3, %v1518_v0, %v1519_v63 }
 0x1fd   : > { %v1031_v8 = vsel %vm598_vm3, %v1523_v3, %v1513_v60  ;;  %v1033_v6 = vsel %vm598_vm3, %v1524_v2, %v1518_v0  ;;  %v1527_v9 = vpop.permute.xlu0 %1526  ;;  %v1413_v10 = vpack.c.bf16 %v1034_v7, %v1032_v4 }
 0x1fe   : > { %v1415_v5 = vpack.c.bf16 %v1033_v6, %v1031_v8  ;;  %v1532_v11 = vpop.permute.xlu1 %1531  ;;  %v1529_v12 = vunpack.i.h.bf16 %v1527_v9  ;;  %v1528_v13 = vunpack.i.l.bf16 %v1527_v9 }
 0x1ff   : > { %v1534_v14 = vunpack.i.h.bf16 %v1532_v11  ;;  %v1533_v15 = vunpack.i.l.bf16 %v1532_v11  ;;  %1414 = vmatprep.subr.bf16.mxu1 %v1413_v10 }
 0x200   : > { %1416 = vmatpush1.bf16.msra.mxu1 %v1415_v5  ;;  %v842_v16 = vsel %vm256_vm2, %v1528_v13, %v1529_v12 }
 0x201   : > { %v1537_v19 = vpop.permute.xlu0 %1536  ;;  %1370 = vmatprep.subr.msk.mxu1 %vm266_vm1, %v1762_v17  ;;  %v844_v21 = vsel %vm256_vm2, %v1533_v15, %v1534_v14 }
 0x202   : > { %v1539_v22 = vunpack.i.h.bf16 %v1537_v19  ;;  %v1538_v23 = vunpack.i.l.bf16 %v1537_v19  ;;  %v1404_v24 = vpack.c.bf16 %v844_v21, %v842_v16 }
 0x203   : > { %1368 = vmatmul.mubr.msk.f32.vlgmr.msra.gmra.mrb[2].mxu1 %vm849_vm8, %v1366_v18 }
 0x204   : > { %v843_v25 = vsel %vm256_vm2, %v1539_v22, %v1533_v15  ;;  %v841_v26 = vsel %vm256_vm2, %v1538_v23, %v1528_v13  ;;  %1405 = vmatprep.subr.bf16.mxu0 %v1404_v24  ;;  %1371 = vmatpush1.msk.msra.mxu1 %vm266_vm1, %v1776_v20  ;;  %v1126_v20 = vld [vmem:[%s1922_s4] sm:$0xff] }
 0x205   : > { %v1406_v17 = vpack.c.bf16 %v843_v25, %v841_v26  ;;  %1115 = vmatprep.mubr.f32.mxu1 %v1623_v1 }
 0x207   : > { %1407 = vmatpush1.bf16.msra.mxu0 %v1406_v17  ;;  %1369 = vmatmul.mubr.msk.f32.gmra.mrb[4].mxu1 %vm849_vm8, %v1367_v27 }
 0x208   : > { %1198 = vmatprep.mubr.f32.mxu1 %v1623_v1 }
 0x20a   : > { %1358 = vmatmul.mubr.msk.f32.vlgmr.msra.gmra.mrb[4].mxu0 %vm849_vm8, %v1356_v28 }
 0x20b   : > { %1372 = vmatmul.mubr.msk.f32.vlgmr.msra.gmra.mrb[2].mxu1 %vm259_vm0, %v1126_v20  ;;  %926 = vmatprep.mubr.f32.mxu0 %v1623_v1 }
 0x20c   : > { %1204 = vmatprep.mubr.f32.mxu1 %v1623_v1 }
 0x20e   : > { %1359 = vmatmul.mubr.msk.f32.gmra.mrb[6].mxu0 %vm849_vm8, %v1357_v29 }
 0x20f   : > { %1373 = vmatmul.mubr.msk.f32.gmra.mrb[4].mxu1 %vm259_vm0, %v1127_v30  ;;  %v1213_v32 = vpop.permute.xlu1 %1212 }
 0x212   : > { %v1217_v39 = vpop.permute.xlu0 %1216 }
 0x2dd   : > { %v922_v31 = vpop.f32.mrb[4].mxu0 }
 0x2de   : > { %v1200_v33 = vpop.f32.mrb[2].mxu1  ;;  %v924_v34 = vpop.f32.mrb[5].mxu0 }
 0x2df   : > { %v1417_v35 = vadd.f32 %v1200_v33, %v922_v31  ;;  %v1202_v36 = vpop.f32.mrb[3].mxu1 }
 0x2e0   : > { %v1419_v37 = vadd.f32 %v1202_v36, %v924_v34 }
 0x2e1   : > { %v1418_v1 = vadd.f32 %v1417_v35, %v1213_v32  ;;  %v928_v38 = vpop.f32.mrb[6].mxu0 }
 0x2e2   : > { %v1420_v40 = vadd.f32 %v1419_v37, %v1213_v32  ;;  %v1206_v41 = vpop.f32.mrb[4].mxu1  ;;  %v930_v42 = vpop.f32.mrb[7].mxu0 }
 0x2e3   : > { %v1227_v43 = vmax.f32 %v1418_v1, 0.0  ;;  %v1421_v44 = vadd.f32 %v1206_v41, %v928_v38  ;;  %v1208_v45 = vpop.f32.mrb[5].mxu1 }
 0x2e4   : > { %v1228_v46 = vmax.f32 %v1420_v40, 0.0  ;;  %v1423_v47 = vadd.f32 %v1208_v45, %v930_v42 }
 0x2e5   : > { %1231 = vst [vmem:[%s231_s27] sm:$0xff] %v1227_v43  ;;  %v1422_v48 = vadd.f32 %v1421_v44, %v1217_v39 }
 0x2e6   : > { %1232 = vst [vmem:[%s231_s27 + $0x8] sm:$0xff] %v1228_v46  ;;  %v1424_v49 = vadd.f32 %v1423_v47, %v1217_v39 }
 0x2e7   : > { %v1229_v50 = vmax.f32 %v1422_v48, 0.0 }
 0x2e8   : > { %v1230_v51 = vmax.f32 %v1424_v49, 0.0 }
 0x2e9   : > { %1233 = vst [vmem:[%s231_s27 + $0x10] sm:$0xff] %v1229_v50 }
 0x2ea   : > { %1234 = vst [vmem:[%s231_s27 + $0x18] sm:$0xff] %v1230_v51 }
 0x2eb   : > { %1556 = shalt.err (!%p1553_p5)
}
 0x2ec   : > { %s1557_s13 = scalar_lea.hbm %s1868_s8, 512  ;;  %s1561_s24 = scalar_lea.hbm %s1923_s5, 1024 }
 0x2ed   : > { %p1558_p6 = scmp.ne.s32.totalorder %s1868_s8, %s1557_s13  ;;  %p1562_p10 = scmp.lt.u32.totalorder %s1868_s8, %s1923_s5 }
 0x2ee   : > { %p1563_p11 = scmp.lt.u32.totalorder %s1561_s24, %s1557_s13  ;;  %p1565_p13 = scmp.lt.u32.totalorder %s1557_s13, %s1868_s8 }
 0x2ef   : > { %p1559_p7 = pnand %p1558_p6, %p1701_p4 }
 0x2f0   : > { %p1564_p12 = por %p1563_p11, %p1562_p10 }
 0x2f1   : > { %p1560_p9 = pneg %p1559_p7 }
 0x2f2   : > { %p1566_p0 = por %p1565_p13, %p1564_p12 }
 0x2f4   : > { %p1567_p1 = pnand %p1566_p0, %p1560_p9 }
 0x2f6   : > { %1570 = shalt.err (!%p1567_p1)
}
 0x2f7   : > { %s1629_s15 = smov 256   ;;  %s1630_s29 = smov 16  }
 0x2f8   : > { %1446 = dma.vmem_to_hbm [thread:$0]  (%p1701_p4), %s1863_s14, 512, %s1868_s8, %s1872_s9, %s1629_s15, %s1629_s15, %s1630_s29  }
 0x2f9 PF: > { %p1452_p2 = scmp.ge.s32.totalorder %s1621_s23, 2  ;;  %s1266_s7 = sand.u32 1, %s1601_s18  }
 0x2fa   : > { %s1267_s21 = scalar_lea.sflag [#allocation3], %s1266_s7 }
 0x2fb   : > { %p1449_p3 = pnand %p1452_p2, %p1708_p8 }
 0x2fd   : > { %1596 = dma.done.wait (!%p1449_p3), %s1267_s21, 512  }
 0x2fe   : > { %1598 = vsyncadd (!%p1449_p3), %s1267_s21, 4294966784  ;;  %s18_s23 = sadd.s32 1, %s1621_s23   ;;  %s1926_s18 = smov %s1605_s19 }
 0x2ff   : > { %p15_p5 = scmp.ge.s32.totalorder %s18_s23, 4   ;;  %s1927_s19 = smov %s1609_s20 }
 0x300   : > { %s1928_s20 = smov %s1714_s6  ;;  %s1929_s21 = smov %s1617_s22 }
 0x301   : > { %s1930_s22 = smov %s1932_s26  ;;  %17 = sbr.rel (!%p15_p5) target bundleno = 4 (0x4), region = 79 }
 0x308   :  { %1272 = vsyncpa [#allocation3], 1 }
 0x309   :  { %1274 = vsyncpa [#allocation3 + $0x1], 1 }

</bundles_post_ra>
